<compile_context>
chip_gen: v7x
topology: tpu7x:2x2x1
jax: 0.10.0
libtpu: 0.0.40
codegen_flags: <defaults>
</compile_context>

<pallas_src>
import jax
import jax.numpy as jnp
from jax.experimental import pallas as pl
from jax.experimental.pallas import tpu as pltpu


def _round_up(n: int, m: int) -> int:
    return ((n + m - 1) // m) * m


def _tensorcores_per_device() -> int:
    """Best-effort TensorCore count of the default device (1 if unknown)."""
    try:
        n = getattr(jax.devices()[0], "num_cores", 1)
        return max(1, int(n)) if n else 1
    except Exception:
        return 1


def _proprio_encoder_kernel(x_ref, w1_ref, b1_ref, w2_ref, b2_ref, o_ref):
    # Fused hot path: both matmuls + bias + ReLU on one VMEM-resident tile.
    x = x_ref[...]                                                # (TB, D_in)
    h = jnp.dot(x, w1_ref[...], preferred_element_type=jnp.float32)
    h = jnp.maximum(h + b1_ref[...], 0.0)                         # bias + ReLU (f32)
    if h.dtype != w2_ref.dtype:
        # Only when weights are stored in bf16: downcast the f32 accumulator so
        # the second matmul runs at native MXU bf16 rate.
        h = h.astype(w2_ref.dtype)
    y = jnp.dot(h, w2_ref[...], preferred_element_type=jnp.float32)
    o_ref[...] = (y + b2_ref[...]).astype(o_ref.dtype)


def proprio_encoder(proprio, w1, b1, w2, b2, *, block_b: int = 2048,
                    num_cores=None):
    """out = relu(proprio @ w1 + b1) @ w2 + b2.

    proprio: (B, D_in); w1: (D_in, H); b1: (H,); w2: (H, D_out); b2: (D_out,).
    Weights are (in, out) layout, i.e. transposed vs. nn.Linear's (out, in).
    """
    B, D_in = proprio.shape
    H = w1.shape[1]
    D_out = w2.shape[1]
    dtype = proprio.dtype

    if num_cores is None:
        num_cores = _tensorcores_per_device()

    # Batch tile: sublane-aligned. One grid step on single-TC chips; at least
    # `num_cores` tiles on multi-TC chips so every core gets a balanced share.
    TB = min(block_b, _round_up(pl.cdiv(B, num_cores), 8))
    grid = (pl.cdiv(B, TB),)

    # Metadata-only reshapes; no per-call padding of parameters.
    b1_2d = b1.reshape(1, H)
    b2_2d = b2.reshape(1, D_out)

    def _nbytes(a):
        return a.size * jnp.dtype(a.dtype).itemsize

    bytes_accessed = (
        _nbytes(proprio) + _nbytes(w1) + _nbytes(b1) + _nbytes(w2) + _nbytes(b2)
        + B * D_out * jnp.dtype(dtype).itemsize
    )
    cost = pl.CostEstimate(
        flops=2 * B * (D_in * H + H * D_out),
        transcendentals=0,
        bytes_accessed=int(bytes_accessed),
    )

    return pl.pallas_call(
        _proprio_encoder_kernel,
        out_shape=jax.ShapeDtypeStruct((B, D_out), dtype),
        grid=grid,
        in_specs=[
            # Batch-tiled activations (last dim = full extent -> legal).
            pl.BlockSpec((TB, D_in), lambda i: (i, 0)),
            # Weights / biases: constant block index -> VMEM-resident across grid.
            pl.BlockSpec((D_in, H), lambda i: (0, 0)),
            pl.BlockSpec((1, H), lambda i: (0, 0)),
            pl.BlockSpec((H, D_out), lambda i: (0, 0)),
            pl.BlockSpec((1, D_out), lambda i: (0, 0)),
        ],
        out_specs=pl.BlockSpec((TB, D_out), lambda i: (i, 0)),
        compiler_params=pltpu.CompilerParams(
            dimension_semantics=("parallel",)),  # megacore sharding on multi-TC chips
        cost_estimate=cost,
    )(proprio, w1, b1_2d, w2, b2_2d)


def init_params(key, input_dim, hidden_dim, output_dim):
    """Deterministic init mimicking nn.Linear's U(-1/sqrt(fan_in), 1/sqrt(fan_in))."""
    k1, k2, k3, k4 = jax.random.split(key, 4)
    lim1 = 1.0 / jnp.sqrt(jnp.float32(input_dim))
    lim2 = 1.0 / jnp.sqrt(jnp.float32(hidden_dim))
    w1 = jax.random.uniform(k1, (input_dim, hidden_dim), jnp.float32, -lim1, lim1)
    b1 = jax.random.uniform(k2, (hidden_dim,), jnp.float32, -lim1, lim1)
    w2 = jax.random.uniform(k3, (hidden_dim, output_dim), jnp.float32, -lim2, lim2)
    b2 = jax.random.uniform(k4, (output_dim,), jnp.float32, -lim2, lim2)
    return w1, b1, w2, b2


def _ref(proprio, w1, b1, w2, b2):
    return jnp.maximum(proprio @ w1 + b1, 0.0) @ w2 + b2


if __name__ == "__main__":
    D_IN, H, D_OUT = 16, 32, 16
    key = jax.random.PRNGKey(0)
    k_x, k_p, k_x2 = jax.random.split(key, 3)
    w1, b1, w2, b2 = init_params(k_p, D_IN, H, D_OUT)

    # Module-scale case (B=8): single grid step on any chip.
    B = 8
    proprio = jax.random.normal(k_x, (B, D_IN), jnp.float32)
    out = jax.block_until_ready(proprio_encoder(proprio, w1, b1, w2, b2))
    ref = _ref(proprio, w1, b1, w2, b2)
    assert out.shape == (B, D_OUT)
    assert jnp.allclose(out, ref, atol=1e-5, rtol=1e-5)

    # Batched case with auto-detected core count (single step on v5e/v6e).
    B2 = 1000
    proprio2 = jax.random.normal(k_x2, (B2, D_IN), jnp.float32)
    out2 = jax.block_until_ready(proprio_encoder(proprio2, w1, b1, w2, b2))
    ref2 = _ref(proprio2, w1, b1, w2, b2)
    assert out2.shape == (B2, D_OUT)
    assert jnp.allclose(out2, ref2, atol=1e-5, rtol=1e-5)

    # Forced 2-tile split (v7x-style path): exercises the ragged last block
    # (rows 504..999 of a 504-row tile) with masked writeback on any hardware.
    out3 = jax.block_until_ready(
        proprio_encoder(proprio2, w1, b1, w2, b2, num_cores=2))
    assert out3.shape == (B2, D_OUT)
    assert jnp.allclose(out3, ref2, atol=1e-5, rtol=1e-5)

    print("KERNEL_OK")
</pallas_src>

<mosaic_0001>
module attributes {stable_mosaic.version = 11 : i64} {
  func.func @_proprio_encoder_kernel(%arg0: i32, %arg1: memref<8x16xf32, #tpu.memory_space<vmem>>, %arg2: memref<16x32xf32, #tpu.memory_space<vmem>>, %arg3: memref<1x32xf32, #tpu.memory_space<vmem>>, %arg4: memref<32x16xf32, #tpu.memory_space<vmem>>, %arg5: memref<1x16xf32, #tpu.memory_space<vmem>>, %arg6: memref<8x16xf32, #tpu.memory_space<vmem>>) attributes {dimension_semantics = [#tpu.dimension_semantics<parallel>], iteration_bounds = array<i64: 1>, scalar_prefetch = 0 : i64, scratch_operands = 0 : i64, tpu.core_type = #tpu.core_type<tc>, window_params = [{transform_indices = @transform_0, window_bounds = array<i64: 8, 16>}, {pipeline_mode = #tpu.pipeline_mode<synchronous>, transform_indices = @transform_1, window_bounds = array<i64: 16, 32>}, {pipeline_mode = #tpu.pipeline_mode<synchronous>, transform_indices = @transform_2, window_bounds = array<i64: 1, 32>}, {pipeline_mode = #tpu.pipeline_mode<synchronous>, transform_indices = @transform_3, window_bounds = array<i64: 32, 16>}, {pipeline_mode = #tpu.pipeline_mode<synchronous>, transform_indices = @transform_4, window_bounds = array<i64: 1, 16>}, {transform_indices = @transform_5, window_bounds = array<i64: 8, 16>}]} {
    %c0 = arith.constant 0 : index
    %c0_0 = arith.constant 0 : index
    %0 = vector.load %arg1[%c0, %c0_0] : memref<8x16xf32, #tpu.memory_space<vmem>>, vector<8x16xf32>
    %c0_1 = arith.constant 0 : index
    %c0_2 = arith.constant 0 : index
    %1 = vector.load %arg2[%c0_1, %c0_2] : memref<16x32xf32, #tpu.memory_space<vmem>>, vector<16x32xf32>
    %cst = arith.constant dense<0.000000e+00> : vector<8x32xf32>
    %2 = tpu.matmul %0, %1, %cst {dimension_numbers = #tpu.dot_dimension_numbers<[1], [0], [0], [1], [0, 0, 1, 1], [], []>} : vector<8x16xf32>, vector<16x32xf32>, vector<8x32xf32> -> vector<8x32xf32>
    %c0_3 = arith.constant 0 : index
    %c0_4 = arith.constant 0 : index
    %3 = vector.load %arg3[%c0_3, %c0_4] : memref<1x32xf32, #tpu.memory_space<vmem>>, vector<1x32xf32>
    %4 = vector.broadcast %3 : vector<1x32xf32> to vector<8x32xf32>
    %5 = arith.addf %2, %4 : vector<8x32xf32>
    %cst_5 = arith.constant 0.000000e+00 : f32
    %6 = vector.broadcast %cst_5 : f32 to vector<8x32xf32>
    %7 = arith.maximumf %5, %6 : vector<8x32xf32>
    %c0_6 = arith.constant 0 : index
    %c0_7 = arith.constant 0 : index
    %8 = vector.load %arg4[%c0_6, %c0_7] : memref<32x16xf32, #tpu.memory_space<vmem>>, vector<32x16xf32>
    %cst_8 = arith.constant dense<0.000000e+00> : vector<8x16xf32>
    %9 = tpu.matmul %7, %8, %cst_8 {dimension_numbers = #tpu.dot_dimension_numbers<[1], [0], [0], [1], [0, 0, 1, 1], [], []>} : vector<8x32xf32>, vector<32x16xf32>, vector<8x16xf32> -> vector<8x16xf32>
    %c0_9 = arith.constant 0 : index
    %c0_10 = arith.constant 0 : index
    %10 = vector.load %arg5[%c0_9, %c0_10] : memref<1x16xf32, #tpu.memory_space<vmem>>, vector<1x16xf32>
    %11 = vector.broadcast %10 : vector<1x16xf32> to vector<8x16xf32>
    %12 = arith.addf %9, %11 : vector<8x16xf32>
    %c0_11 = arith.constant 0 : index
    %c0_12 = arith.constant 0 : index
    %13 = vector.load %arg6[%c0_11, %c0_12] : memref<8x16xf32, #tpu.memory_space<vmem>>, vector<8x16xf32>
    tpu.vector_store %arg6[%c0_11, %c0_12], %12 {strides = array<i32>} : memref<8x16xf32, #tpu.memory_space<vmem>>, vector<8x16xf32>,
    return
  }
  func.func @transform_0(%arg0: i32) -> (i32, i32) {
    %c0_i32 = arith.constant 0 : i32
    %c0_i32_0 = arith.constant 0 : i32
    return %arg0, %c0_i32 : i32, i32
  }
  func.func @transform_1(%arg0: i32) -> (i32, i32) {
    %c0_i32 = arith.constant 0 : i32
    %c0_i32_0 = arith.constant 0 : i32
    %c0_i32_1 = arith.constant 0 : i32
    return %c0_i32, %c0_i32_0 : i32, i32
  }
  func.func @transform_2(%arg0: i32) -> (i32, i32) {
    %c0_i32 = arith.constant 0 : i32
    %c0_i32_0 = arith.constant 0 : i32
    %c0_i32_1 = arith.constant 0 : i32
    return %c0_i32, %c0_i32_0 : i32, i32
  }
  func.func @transform_3(%arg0: i32) -> (i32, i32) {
    %c0_i32 = arith.constant 0 : i32
    %c0_i32_0 = arith.constant 0 : i32
    %c0_i32_1 = arith.constant 0 : i32
    return %c0_i32, %c0_i32_0 : i32, i32
  }
  func.func @transform_4(%arg0: i32) -> (i32, i32) {
    %c0_i32 = arith.constant 0 : i32
    %c0_i32_0 = arith.constant 0 : i32
    %c0_i32_1 = arith.constant 0 : i32
    return %c0_i32, %c0_i32_0 : i32, i32
  }
  func.func @transform_5(%arg0: i32) -> (i32, i32) {
    %c0_i32 = arith.constant 0 : i32
    %c0_i32_0 = arith.constant 0 : i32
    return %arg0, %c0_i32 : i32, i32
  }
}

</mosaic_0001>

<bundles_post_ra>
// kernel: tpu_custom_call.1
= control target key start
LH: loop header
LB: loop body
LE: loop exit
PB: predicated region body
PF: predicated region fallthrough
CT: control target
= control target key end

     0   :  { %v273_v2 = vmov 0.0|0.0   ;;  %vm274_vm0 = vmmov 0   ;;  %v275_v4 = vmov 0.0   ;;  %s348_s0 = inlined_call_operand.vmem [shape: f32[8,16], index: 0, kind: input, shape index: {}]   ;;  %s349_s1 = inlined_call_operand.vmem [shape: f32[16,32], index: 1, kind: input, shape index: {}]   ;;  %s350_s2 = inlined_call_operand.vmem [shape: f32[1,32], index: 2, kind: input, shape index: {}]   ;;  %s351_s3 = inlined_call_operand.vmem [shape: f32[32,16], index: 3, kind: input, shape index: {}]   ;;  %s352_s4 = inlined_call_operand.vmem [shape: f32[1,16], index: 4, kind: input, shape index: {}]   ;;  %s353_s5 = inlined_call_operand.hbm [shape: f32[8,16], index: 5, kind: output, shape index: {}]  }
   0x1   :  { %v22_v0 = vld [vmem:[%s349_s1] sm:$0xff]  ;;  %v23_v1 = vld [vmem:[%s349_s1 + $0x8] sm:$0xff]  ;;  %236 = vmatprep.subr.bf16.mxu0 %v273_v2  ;;  %222 = vmatprep.mubr.msk.f32.mxu0 %vm274_vm0, %v275_v4 }
   0x2   :  { %v237_v3 = vpack.c.bf16 %v23_v1, %v22_v0  ;;  %v106_v5 = vld [vmem:[%s351_s3] sm:$0xff]  ;;  %v107_v6 = vld [vmem:[%s351_s3 + $0x8] sm:$0xff]  ;;  %239 = vmatprep.subr.bf16.mxu1 %v273_v2  ;;  %233 = vmatprep.mubr.msk.f32.mxu1 %vm274_vm0, %v275_v4 }
   0x3   :  { %v240_v7 = vpack.c.bf16 %v107_v6, %v106_v5 }
   0x4   :  { %10 = vsyncpa [#allocation3], 0  ;;  %238 = vmatpush3.bf16.msra.mxu0 %v237_v3  ;;  %v21_v8 = vld [vmem:[%s348_s0] sm:$0xff]  ;;  %vm31_vm1 = vcmask 130048   ;;  %v108_v9 = vld [vmem:[%s351_s3 + $0x10] sm:$0xff]  ;;  %vm117_vm2 = vcmask 261120  }
   0x5   :  { %241 = vmatpush3.bf16.msra.mxu1 %v240_v7  ;;  %v109_v10 = vld [vmem:[%s351_s3 + $0x18] sm:$0xff]  ;;  %v206_v12 = vld [vmem:[%s350_s2] ss:$0 sm:$0xff]  ;;  %s276_s9 = smov [#allocation2]  }
   0x6   :  { %242 = vmatprep.subr.bf16.mxu1 %v273_v2  ;;  %v243_v11 = vpack.c.bf16 %v109_v10, %v108_v9  ;;  %v208_v17 = vld [vmem:[%s352_s4] ss:$0 sm:$0xff]  ;;  %s198_s10 = sshll.u32 %s276_s9, 4  ;;  %s199_s10 = int_to_ptr.vmem [resolvable:$true] %s198_s10 }
   0x7   :  { %223 = vmatmul.mubr.msk.f32.vlgmr.msra.gmra.mrb[0].mxu0 %vm31_vm1, %v21_v8  ;;  %s249_s3 = scalar_lea.vmem %s199_s10, 128  ;;  %p254_p1 = scmp.lt.s32.totalorder %s199_s10, %s199_s10 }
   0x8   :  { %p250_p0 = scmp.ne.s32.totalorder %s199_s10, %s249_s3  ;;  %p255_p2 = scmp.lt.s32.totalorder %s249_s3, %s249_s3 }
   0x9   :  { %244 = vmatpush3.bf16.msra.mxu1 %v243_v11 }
   0xa   :  { %p256_p3 = por %p255_p2, %p254_p1 }
   0xc   :  { %p257_p4 = pnand %p256_p3, %p250_p0 }
  0xda   :  { %v101_v13 = vpop.f32.mrb[0].mxu0 }
  0xdb   :  { %v102_v14 = vadd.f32 %v206_v12, %v101_v13  ;;  %v224_v15 = vpop.f32.mrb[1].mxu0 }
  0xdd   :  { %v105_v16 = vmax.f32 %v102_v14, 0.0 }
  0xdf   :  { %234 = vmatmul.mubr.msk.f32.vlgmr.msra.gmra.mrb[0].mxu1 %vm117_vm2, %v105_v16 }
 0x1b2   :  { %v187_v18 = vpop.f32.mrb[0].mxu1 }
 0x1b3   :  { %v188_v19 = vadd.f32 %v208_v17, %v187_v18  ;;  %v235_v20 = vpop.f32.mrb[1].mxu1 }
 0x1b5   :  { %191 = vst.msk [vmem:[#allocation2] sm:$0xff] %vm31_vm1, %v188_v19 }
 0x1b6   :  { %260 = shalt.err (!%p257_p4)
}
 0x1b7   :  { %s261_s12 = scalar_lea.hbm %s353_s5, 128 }
 0x1b8   :  { %p262_p5 = scmp.ne.s32.totalorder %s353_s5, %s261_s12  ;;  %p265_p6 = scmp.lt.u32.totalorder %s261_s12, %s353_s5 }
 0x1ba   :  { %p267_p7 = pnand %p265_p6, %p262_p5 }
 0x1bc   :  { %270 = shalt.err (!%p267_p7)
}
 0x1bd   :  { %201 = dma.vmem_to_hbm [thread:$0]  %s199_s10, 128, %s353_s5, [#allocation3]  }
 0x1be   :  { %271 = dma.done.wait [#allocation3], 128  }
 0x1bf   :  { %272 = vsyncadd [#allocation3], 4294967168 }
 0x1c0   :  { %205 = vsyncpa [#allocation3], 1 }

</bundles_post_ra>
